<compile_context>
chip_gen: v7x
topology: tpu7x:2x2x1
jax: 0.10.0
libtpu: 0.0.40
codegen_flags: <defaults>
</compile_context>

<pallas_src>
import jax
import jax.numpy as jnp
from jax.experimental import pallas as pl
from jax.experimental.pallas import tpu as pltpu

_WIDE = 1024            # lane-dense last dim (multiple of 128)
_BLOCK_ROWS = 256       # 256 * 1024 * 4 B = 1 MiB f32 per block
_SINGLE_BLOCK_MAX = 1024  # <= this many labels: one (1, n) block, no grid/pad
_PALLAS_MIN_SIZE = 4096   # below this, a fused XLA softplus beats any kernel launch


def _softplus_kernel(x_ref, o_ref):
    # Numerically stable softplus: max(x, 0) + log1p(exp(-|x|)).
    # Upcast to f32 for the EUP exp/log1p; store back in the I/O dtype.
    x = x_ref[...].astype(jnp.float32)
    y = jnp.maximum(x, 0.0) + jnp.log1p(jnp.exp(-jnp.abs(x)))
    o_ref[...] = y.astype(o_ref.dtype)


@jax.jit
def _softplus_impl(x):
    """Elementwise softplus of a 1-D vector via Pallas (single executable)."""
    n = x.shape[0]
    itemsize = jnp.dtype(x.dtype).itemsize

    if n <= _SINGLE_BLOCK_MAX:
        # Single block == full array: no pad, no slice, no grid.
        x2 = x.reshape(1, n)
        out = pl.pallas_call(
            _softplus_kernel,
            out_shape=jax.ShapeDtypeStruct((1, n), x.dtype),
            in_specs=[pl.BlockSpec((1, n), lambda: (0, 0))],
            out_specs=pl.BlockSpec((1, n), lambda: (0, 0)),
            cost_estimate=pl.CostEstimate(
                flops=4 * n, transcendentals=2 * n,
                bytes_accessed=2 * n * itemsize),
        )(x2)
        return out.reshape(n)

    # Lane-dense tiled path: (rows, 1024) layout, 1-D parallel grid over rows.
    rows = pl.cdiv(n, _WIDE)
    block_rows = min(_BLOCK_ROWS, rows)
    rows_padded = pl.cdiv(rows, block_rows) * block_rows   # exact grid division
    cap = rows_padded * _WIDE

    xp = jnp.pad(x, (0, cap - n)) if cap != n else x
    tile = xp.reshape(rows_padded, _WIDE)

    grid = (rows_padded // block_rows,)
    out = pl.pallas_call(
        _softplus_kernel,
        out_shape=jax.ShapeDtypeStruct((rows_padded, _WIDE), x.dtype),
        grid=grid,
        in_specs=[pl.BlockSpec((block_rows, _WIDE), lambda i: (i, 0))],
        out_specs=pl.BlockSpec((block_rows, _WIDE), lambda i: (i, 0)),
        compiler_params=pltpu.CompilerParams(
            dimension_semantics=("parallel",)),
        cost_estimate=pl.CostEstimate(
            flops=4 * cap, transcendentals=2 * cap,
            bytes_accessed=2 * cap * itemsize),
    )(tile)

    out = out.reshape(cap)
    return out[:n] if cap != n else out


# --- differentiable softplus built on the Pallas forward ---------------------
@jax.custom_vjp
def softplus_pallas(x):
    """Elementwise softplus of a 1-D vector via the Pallas kernel."""
    return _softplus_impl(x)


def _softplus_vjp_fwd(x):
    return _softplus_impl(x), x


def _softplus_vjp_bwd(x, g):
    # d/dx softplus(x) = sigmoid(x); cotangent cast back to the primal dtype.
    sig = jax.nn.sigmoid(x.astype(jnp.float32))
    return ((g.astype(jnp.float32) * sig).astype(x.dtype),)


softplus_pallas.defvjp(_softplus_vjp_fwd, _softplus_vjp_bwd)


# --- gradient reversal (identity forward, -grad backward) --------------------
# Matches GradientReversedLambda.apply semantics; pure autodiff glue, no kernel.
@jax.custom_vjp
def grad_reversed(x):
    return x


def _gr_fwd(x):
    return x, None


def _gr_bwd(_, g):
    return (-g,)


grad_reversed.defvjp(_gr_fwd, _gr_bwd)


def non_negative_lambda_forward(param_x):
    """Forward pass of NonNegativeLambda: grad_reverse(softplus(x)).

    For tiny label counts the kernel launch is pure overhead, so dispatch to
    the fused XLA softplus; large vectors use the tiled Pallas kernel.
    """
    if param_x.shape[0] >= _PALLAS_MIN_SIZE:
        sp = softplus_pallas(param_x)
    else:
        sp = jax.nn.softplus(param_x)
    return grad_reversed(sp)


if __name__ == "__main__":
    num_labels = 8

    # Deterministic parameter init, matching the module __init__:
    # torch.tensor([0.0] * num_labels)
    param_x = jnp.zeros((num_labels,), jnp.float32)

    out = jax.block_until_ready(non_negative_lambda_forward(param_x))
    ref = jnp.full((num_labels,), jnp.log(2.0), jnp.float32)  # softplus(0)=log 2
    assert out.shape == (num_labels,)
    assert jnp.allclose(out, ref, atol=1e-6), (out, ref)

    key = jax.random.PRNGKey(0)
    k1, k2 = jax.random.split(key)

    # Pallas single-block path (block == full array, no pad/slice, no grid).
    probe_small = jax.random.normal(k1, (num_labels,), jnp.float32) * 3.0
    got_small = jax.block_until_ready(softplus_pallas(probe_small))
    want_small = jax.nn.softplus(probe_small)
    assert jnp.allclose(got_small, want_small, atol=1e-5), (got_small, want_small)

    # Pallas tiled path (lane-dense (256, 1024) blocks, multi-step parallel grid).
    n_tiled = 300_000
    probe_tiled = jax.random.normal(k2, (n_tiled,), jnp.float32) * 3.0
    got_tiled = jax.block_until_ready(softplus_pallas(probe_tiled))
    want_tiled = jax.nn.softplus(probe_tiled)
    assert got_tiled.shape == (n_tiled,)
    assert jnp.allclose(got_tiled, want_tiled, atol=1e-5)

    # Gradient through Pallas softplus + gradient reversal: d/dx = -sigmoid(x).
    grad = jax.block_until_ready(
        jax.grad(lambda p: jnp.sum(grad_reversed(softplus_pallas(p))))(probe_small)
    )
    grad_ref = -jax.nn.sigmoid(probe_small)
    assert jnp.allclose(grad, grad_ref, atol=1e-5), (grad, grad_ref)

    print("KERNEL_OK")
</pallas_src>

<mosaic_0001>
module attributes {stable_mosaic.version = 11 : i64} {
  func.func @_softplus_kernel(%arg0: memref<1x8xf32, #tpu.memory_space<vmem>>, %arg1: memref<1x8xf32, #tpu.memory_space<vmem>>) attributes {dimension_semantics = [], scalar_prefetch = 0 : i64, scratch_operands = 0 : i64, tpu.core_type = #tpu.core_type<tc>} {
    %c0 = arith.constant 0 : index
    %c0_0 = arith.constant 0 : index
    %0 = vector.load %arg0[%c0, %c0_0] : memref<1x8xf32, #tpu.memory_space<vmem>>, vector<1x8xf32>
    %cst = arith.constant 0.000000e+00 : f32
    %1 = vector.broadcast %cst : f32 to vector<1x8xf32>
    %2 = arith.maximumf %0, %1 : vector<1x8xf32>
    %3 = math.absf %0 : vector<1x8xf32>
    %cst_1 = arith.constant 0.000000e+00 : f32
    %4 = vector.broadcast %cst_1 : f32 to vector<1x8xf32>
    %5 = arith.subf %4, %3 : vector<1x8xf32>
    %6 = math.exp %5 : vector<1x8xf32>
    %7 = math.log1p %6 : vector<1x8xf32>
    %8 = arith.addf %2, %7 : vector<1x8xf32>
    %c0_2 = arith.constant 0 : index
    %c0_3 = arith.constant 0 : index
    %9 = vector.load %arg1[%c0_2, %c0_3] : memref<1x8xf32, #tpu.memory_space<vmem>>, vector<1x8xf32>
    tpu.vector_store %arg1[%c0_2, %c0_3], %8 {strides = array<i32>} : memref<1x8xf32, #tpu.memory_space<vmem>>, vector<1x8xf32>,
    return
  }
}

</mosaic_0001>

<bundles_post_ra>
// kernel: _softplus_impl.1
= control target key start
LH: loop header
LB: loop body
LE: loop exit
PB: predicated region body
PF: predicated region fallthrough
CT: control target
= control target key end

     0   :  { %s96_s0 = inlined_call_operand.vmem [shape: f32[1,8], index: 0, kind: input, shape index: {}]   ;;  %s97_s1 = inlined_call_operand.hbm [shape: f32[1,8], index: 1, kind: output, shape index: {}]  }
   0x1   :  { %v9_v0 = vld [vmem:[%s96_s0] sm:$0x1] }
   0x2   :  { %6 = vsyncpa [#allocation3], 0  ;;  %v11_v1 = vand.u32 2147483647, %v9_v0  ;;  %v10_v11 = vmax.f32 %v9_v0, 0.0  ;;  %s70_s8 = smov [#allocation2]  }
   0x3   :  { %s33_s9 = sshll.u32 %s70_s8, 4  ;;  %vm25_vm1 = vcmask 57344   ;;  %s34_s9 = int_to_ptr.vmem [resolvable:$true] %s33_s9 }
   0x4   :  { %v12_v2 = vsub.f32 0.0, %v11_v1  ;;  %s46_s0 = scalar_lea.vmem %s34_s9, 16  ;;  %s50_s10 = scalar_lea.vmem %s34_s9, 32 }
   0x5   :  { %p47_p0 = scmp.ne.s32.totalorder %s34_s9, %s46_s0  ;;  %p51_p1 = scmp.lt.s32.totalorder %s34_s9, %s34_s9 }
   0x6   :  { %v13_v3 = vmul.f32 1.442695, %v12_v2  ;;  %p52_p2 = scmp.lt.s32.totalorder %s50_s10, %s46_s0 }
   0x8   :  { %42 = vpow2.f32 %v13_v3  ;;  %p53_p3 = por %p52_p2, %p51_p1 }
   0xa   :  { %p54_p4 = pnand %p53_p3, %p47_p0 }
  0x12   :  { %v43_v4 = vpop.eup %42 }
  0x13   :  { %v15_v5 = vadd.f32 1.0, %v43_v4  ;;  %v18_v6 = vmul.f32 -0.5, %v43_v4  ;;  %v21_v8 = vand.u32 2147483647, %v43_v4 }
  0x15   :  { %44 = vlog2.f32 %v15_v5  ;;  %v19_v7 = vadd.f32 1.0, %v18_v6  ;;  %vm22_vm0 = vcmp.lt.f32.partialorder %v21_v8, 0.0004427343 }
  0x17   :  { %v20_v9 = vmul.f32 %v43_v4, %v19_v7 }
  0x1f   :  { %v45_v10 = vpop.eup %44 }
  0x20   :  { %v17_v12 = vmul.f32 0.6931472, %v45_v10 }
  0x22   :  { %v23_v13 = vsel %vm22_vm0, %v20_v9, %v17_v12 }
  0x23   :  { %v24_v14 = vadd.f32 %v23_v13, %v10_v11 }
  0x25   :  { %26 = vst.msk [vmem:[#allocation2] sm:$0x1] %vm25_vm1, %v24_v14 }
  0x26   :  { %57 = shalt.err (!%p54_p4)
}
  0x27   :  { %s58_s13 = scalar_lea.hbm %s97_s1, 16 }
  0x28   :  { %p59_p5 = scmp.ne.s32.totalorder %s97_s1, %s58_s13  ;;  %p62_p6 = scmp.lt.u32.totalorder %s58_s13, %s97_s1 }
  0x2a   :  { %p64_p7 = pnand %p62_p6, %p59_p5 }
  0x2c   :  { %67 = shalt.err (!%p64_p7)
}
  0x2d   :  { %36 = dma.vmem_to_hbm [thread:$0]  %s34_s9, 16, %s97_s1, [#allocation3]  }
  0x2e   :  { %68 = dma.done.wait [#allocation3], 16  }
  0x2f   :  { %69 = vsyncadd [#allocation3], 4294967280 }
  0x30   :  { %40 = vsyncpa [#allocation3], 1 }

</bundles_post_ra>
